<compile_context>
chip_gen: v6e
topology: v6e:2x2x1
jax: 0.10.0
libtpu: 0.0.40
codegen_flags: <defaults>
</compile_context>

<pallas_src>
import jax
import jax.numpy as jnp
from jax.experimental import pallas as pl
from jax.experimental.pallas import tpu as pltpu

EPS = 1e-5
_VMEM_LIMIT_BYTES = 48 * 1024 * 1024   # explicit scoped budget (v5e default is 16 MiB;
                                       # stays under v7x's 64 MiB/TC physical VMEM)
_TARGET_TILE_BYTES = 8 * 1024 * 1024   # per-tile byte target; pass 2 double-buffers
                                       # in + out -> ~4x this, inside the limit above


def _stats_kernel(x_ref, sum_ref, sumsq_ref):
    """Per-N-tile partial per-channel sum / sum-of-squares.

    x_ref:              (tile_n, dim_m, tile_hw) block of the (N_m, dim_m, HW_pad) input.
    sum_ref/sumsq_ref:  (1, dim_m, 1) f32 blocks of a (grid_n, dim_m, 1) output.
    The output block index depends only on the N tile, so it stays VMEM-resident
    across the HW ("arbitrary") axis and acts as an accumulator; per-N-tile
    partials keep the N axis "parallel" (megacore-friendly on v7x).
    """
    @pl.when(pl.program_id(1) == 0)
    def _():
        sum_ref[...] = jnp.zeros_like(sum_ref)
        sumsq_ref[...] = jnp.zeros_like(sumsq_ref)

    x = x_ref[...].astype(jnp.float32)
    sum_ref[...] += jnp.sum(x, axis=(0, 2), keepdims=True)
    sumsq_ref[...] += jnp.sum(x * x, axis=(0, 2), keepdims=True)


def _normalize_kernel(x_ref, scale_ref, shift_ref, o_ref):
    """y = x * scale + shift with pre-folded per-channel scale/shift.

    Arithmetic runs in the dtype of scale/shift (bf16 for bf16 inputs, else
    f32); an affine scale/shift tolerates bf16 and it halves vreg traffic on
    bf16-capable VPUs.
    """
    x = x_ref[...]
    scale = scale_ref[...][None, :, :]   # (1, dim_m, 1)
    shift = shift_ref[...][None, :, :]   # (1, dim_m, 1)
    o_ref[...] = (x * scale + shift).astype(o_ref.dtype)


def _sublane_fold(n, dim, elem_bytes):
    """Fold g samples into the channel axis so dim_m fills the sublane packing."""
    sub_req = max(1, (8 * 4) // elem_bytes)       # 8 (f32), 16 (bf16), 32 (int8)
    if dim < sub_req and sub_req % dim == 0:
        g = sub_req // dim
        if n % g == 0:
            return g
    return 1


def _choose_tiles(n_m, dim_m, hw_pad, elem_bytes):
    """Spend the tile byte budget on the lane (HW) axis first, then on N."""
    lane_budget = max(128, _TARGET_TILE_BYTES // (dim_m * elem_bytes))
    n_lane_groups = hw_pad // 128
    tile_hw = 128
    for d in range(1, n_lane_groups + 1):
        if n_lane_groups % d == 0 and 128 * d <= lane_budget:
            tile_hw = 128 * d
    per_n_bytes = dim_m * tile_hw * elem_bytes
    n_budget = max(1, _TARGET_TILE_BYTES // per_n_bytes)
    tile_n = 1
    for c in range(1, n_m + 1):
        if n_m % c == 0 and c <= n_budget:
            tile_n = c
    return tile_n, tile_hw


def norm1_forward(x, gamma, beta, dim):
    """x: (B, H, W) with B divisible by dim.  Returns (B, H, W).

    Matches Norm1.forward in training mode (batch statistics):
      x.view(N, dim, H, W) -> BatchNorm2d(dim) -> view(B, H, W)
    """
    B, H, W = x.shape
    assert B % dim == 0, "batch of folded input must be divisible by dim"
    N = B // dim
    HW = H * W
    elem_bytes = jnp.dtype(x.dtype).itemsize

    # --- layout prep: contiguous reshapes only (no transposes) ---
    x3 = x.reshape(N, dim, HW)

    # Pad the lane axis up to a multiple of 128 so every tile stays lane-dense
    # and the tiler never needs a huge full-HW fallback block.  Zero padding
    # leaves the channel sums untouched; the true count N*HW is used below.
    hw_pad = ((HW + 127) // 128) * 128
    if hw_pad != HW:
        x3 = jnp.pad(x3, ((0, 0), (0, 0), (0, hw_pad - HW)))

    # Fold g batch samples into the channel axis when dim under-fills the
    # sublane packing (e.g. dim=4 @ f32), so vregs / VMEM tiles are dense.
    g = _sublane_fold(N, dim, elem_bytes)
    n_m, dim_m = N // g, g * dim
    x3 = x3.reshape(n_m, dim_m, hw_pad)

    tile_n, tile_hw = _choose_tiles(n_m, dim_m, hw_pad, elem_bytes)
    grid = (n_m // tile_n, hw_pad // tile_hw)
    grid_n = grid[0]

    x_spec = pl.BlockSpec((tile_n, dim_m, tile_hw), lambda n, t: (n, 0, t))
    partial_spec = pl.BlockSpec((1, dim_m, 1), lambda n, t: (n, 0, 0))
    chan_spec = pl.BlockSpec((dim_m, 1), lambda n, t: (0, 0))

    # ---- Pass 1: streaming per-channel partial sums (N axis megacore-parallel) ----
    psum, psumsq = pl.pallas_call(
        _stats_kernel,
        out_shape=(jax.ShapeDtypeStruct((grid_n, dim_m, 1), jnp.float32),
                   jax.ShapeDtypeStruct((grid_n, dim_m, 1), jnp.float32)),
        grid=grid,
        in_specs=[x_spec],
        out_specs=(partial_spec, partial_spec),
        compiler_params=pltpu.CompilerParams(
            dimension_semantics=("parallel", "arbitrary"),
            vmem_limit_bytes=_VMEM_LIMIT_BYTES),
    )(x3)

    # ---- Tiny JAX fold: merge partials, undo sublane fold, build the affine ----
    # TODO(synk): E[x^2]-mean^2 can cancel for very large N*HW with large means;
    # a shifted sum-of-squares would be more robust (unnecessary at these scales).
    sums = jnp.sum(psum, axis=0).reshape(g, dim).sum(axis=0)       # (dim,)
    sumsqs = jnp.sum(psumsq, axis=0).reshape(g, dim).sum(axis=0)   # (dim,)
    count = jnp.float32(N * HW)
    mean = sums / count
    var = jnp.maximum(sumsqs / count - mean * mean, 0.0)           # biased var (BN norm)
    inv = jax.lax.rsqrt(var + EPS)
    scale = gamma.astype(jnp.float32) * inv                        # (dim,)
    shift = beta.astype(jnp.float32) - mean * scale                # (dim,)

    # bf16 inputs: do the pass-2 affine in bf16 (native on v6e/v7x VPUs);
    # everything else computes in f32.
    compute_dtype = x.dtype if x.dtype == jnp.bfloat16 else jnp.float32
    scale_m = jnp.tile(scale, (g,)).reshape(dim_m, 1).astype(compute_dtype)
    shift_m = jnp.tile(shift, (g,)).reshape(dim_m, 1).astype(compute_dtype)

    # ---- Pass 2: fused normalize y = x*scale + shift (fully parallel stream) ----
    y3 = pl.pallas_call(
        _normalize_kernel,
        out_shape=jax.ShapeDtypeStruct((n_m, dim_m, hw_pad), x.dtype),
        grid=grid,
        in_specs=[x_spec, chan_spec, chan_spec],
        out_specs=x_spec,
        compiler_params=pltpu.CompilerParams(
            dimension_semantics=("parallel", "parallel"),
            vmem_limit_bytes=_VMEM_LIMIT_BYTES),
    )(x3, scale_m, shift_m)

    y = y3.reshape(N, dim, hw_pad)
    if hw_pad != HW:
        y = y[:, :, :HW]
    return y.reshape(B, H, W)


def norm1_reference(x, gamma, beta, dim):
    """Pure-JAX reference for BatchNorm2d (training mode, batch statistics)."""
    B, H, W = x.shape
    N = B // dim
    x4 = x.reshape(N, dim, H, W).astype(jnp.float32)
    mean = jnp.mean(x4, axis=(0, 2, 3), keepdims=True)
    var = jnp.mean((x4 - mean) ** 2, axis=(0, 2, 3), keepdims=True)
    y = (x4 - mean) / jnp.sqrt(var + EPS)
    y = y * gamma.reshape(1, dim, 1, 1) + beta.reshape(1, dim, 1, 1)
    return y.reshape(B, H, W).astype(x.dtype)


if __name__ == "__main__":
    key = jax.random.PRNGKey(0)
    k1, k2, k3, k4 = jax.random.split(key, 4)

    # Case 1: the module's implied shapes — folded batch B = N*dim, f32,
    # HW a multiple of 128 (exercises the sublane-fold path: dim=4 @ f32 -> g=2).
    dim = 4
    N, H, W = 2, 16, 16
    B = N * dim
    x = jax.random.normal(k1, (B, H, W), dtype=jnp.float32)
    gamma = 1.0 + 0.1 * jax.random.normal(k2, (dim,), dtype=jnp.float32)
    beta = 0.1 * jax.random.normal(k3, (dim,), dtype=jnp.float32)

    out = jax.block_until_ready(norm1_forward(x, gamma, beta, dim))
    ref = norm1_reference(x, gamma, beta, dim)
    assert out.shape == (B, H, W)
    assert jnp.allclose(out, ref, atol=1e-4, rtol=1e-4), "case 1 mismatch"

    # Case 2: HW not a multiple of 128 and dim that can't be sublane-folded
    # (exercises the zero-pad path and g=1).
    dim2, N2, H2, W2 = 3, 4, 6, 6
    B2 = N2 * dim2
    x2 = jax.random.normal(k4, (B2, H2, W2), dtype=jnp.float32)
    gamma2 = jnp.ones((dim2,), dtype=jnp.float32)
    beta2 = jnp.zeros((dim2,), dtype=jnp.float32)

    out2 = jax.block_until_ready(norm1_forward(x2, gamma2, beta2, dim2))
    ref2 = norm1_reference(x2, gamma2, beta2, dim2)
    assert out2.shape == (B2, H2, W2)
    assert jnp.allclose(out2, ref2, atol=1e-4, rtol=1e-4), "case 2 mismatch"

    print("KERNEL_OK")
</pallas_src>

<mosaic_0001>
module attributes {stable_mosaic.version = 11 : i64} {
  func.func @_stats_kernel(%arg0: i32, %arg1: i32, %arg2: memref<1x8x256xf32, #tpu.memory_space<vmem>>, %arg3: memref<1x8x1xf32, #tpu.memory_space<vmem>>, %arg4: memref<1x8x1xf32, #tpu.memory_space<vmem>>) attributes {dimension_semantics = [#tpu.dimension_semantics<parallel>, #tpu.dimension_semantics<arbitrary>], iteration_bounds = array<i64: 1, 1>, scalar_prefetch = 0 : i64, scratch_operands = 0 : i64, tpu.core_type = #tpu.core_type<tc>, window_params = [{transform_indices = @transform_0, window_bounds = array<i64: 1, 8, 256>}, {transform_indices = @transform_1, window_bounds = array<i64: 1, 8, 1>}, {transform_indices = @transform_2, window_bounds = array<i64: 1, 8, 1>}]} {
    %c0_i32 = arith.constant 0 : i32
    %0 = arith.cmpi eq, %arg1, %c0_i32 : i32
    %1 = arith.extui %0 : i1 to i32
    %c0_i32_0 = arith.constant 0 : i32
    %2 = arith.cmpi ne, %1, %c0_i32_0 : i32
    scf.if %2 {
      %cst_16 = arith.constant 0.000000e+00 : f32
      %15 = vector.broadcast %cst_16 : f32 to vector<1x8x1xf32>
      %c0_17 = arith.constant 0 : index
      %c0_18 = arith.constant 0 : index
      %c0_19 = arith.constant 0 : index
      %16 = vector.load %arg3[%c0_17, %c0_18, %c0_19] : memref<1x8x1xf32, #tpu.memory_space<vmem>>, vector<1x8x1xf32>
      tpu.vector_store %arg3[%c0_17, %c0_18, %c0_19], %15 {strides = array<i32>} : memref<1x8x1xf32, #tpu.memory_space<vmem>>, vector<1x8x1xf32>,
      %cst_20 = arith.constant 0.000000e+00 : f32
      %17 = vector.broadcast %cst_20 : f32 to vector<1x8x1xf32>
      %c0_21 = arith.constant 0 : index
      %c0_22 = arith.constant 0 : index
      %c0_23 = arith.constant 0 : index
      %18 = vector.load %arg4[%c0_21, %c0_22, %c0_23] : memref<1x8x1xf32, #tpu.memory_space<vmem>>, vector<1x8x1xf32>
      tpu.vector_store %arg4[%c0_21, %c0_22, %c0_23], %17 {strides = array<i32>} : memref<1x8x1xf32, #tpu.memory_space<vmem>>, vector<1x8x1xf32>,
    } else {
    }
    %c0 = arith.constant 0 : index
    %c0_1 = arith.constant 0 : index
    %c0_2 = arith.constant 0 : index
    %3 = vector.load %arg2[%c0, %c0_1, %c0_2] : memref<1x8x256xf32, #tpu.memory_space<vmem>>, vector<1x8x256xf32>
    %c0_3 = arith.constant 0 : index
    %c0_4 = arith.constant 0 : index
    %c0_5 = arith.constant 0 : index
    %4 = vector.load %arg3[%c0_3, %c0_4, %c0_5] : memref<1x8x1xf32, #tpu.memory_space<vmem>>, vector<1x8x1xf32>
    %cst = arith.constant dense<0.000000e+00> : vector<8xf32>
    %5 = vector.multi_reduction <add>, %3, %cst [0, 2] : vector<1x8x256xf32> to vector<8xf32>
    %6 = vector.shape_cast %5 : vector<8xf32> to vector<1x8x1xf32>
    %7 = arith.addf %4, %6 : vector<1x8x1xf32>
    %c0_6 = arith.constant 0 : index
    %c0_7 = arith.constant 0 : index
    %c0_8 = arith.constant 0 : index
    %8 = vector.load %arg3[%c0_6, %c0_7, %c0_8] : memref<1x8x1xf32, #tpu.memory_space<vmem>>, vector<1x8x1xf32>
    tpu.vector_store %arg3[%c0_6, %c0_7, %c0_8], %7 {strides = array<i32>} : memref<1x8x1xf32, #tpu.memory_space<vmem>>, vector<1x8x1xf32>,
    %c0_9 = arith.constant 0 : index
    %c0_10 = arith.constant 0 : index
    %c0_11 = arith.constant 0 : index
    %9 = vector.load %arg4[%c0_9, %c0_10, %c0_11] : memref<1x8x1xf32, #tpu.memory_space<vmem>>, vector<1x8x1xf32>
    %10 = arith.mulf %3, %3 : vector<1x8x256xf32>
    %cst_12 = arith.constant dense<0.000000e+00> : vector<8xf32>
    %11 = vector.multi_reduction <add>, %10, %cst_12 [0, 2] : vector<1x8x256xf32> to vector<8xf32>
    %12 = vector.shape_cast %11 : vector<8xf32> to vector<1x8x1xf32>
    %13 = arith.addf %9, %12 : vector<1x8x1xf32>
    %c0_13 = arith.constant 0 : index
    %c0_14 = arith.constant 0 : index
    %c0_15 = arith.constant 0 : index
    %14 = vector.load %arg4[%c0_13, %c0_14, %c0_15] : memref<1x8x1xf32, #tpu.memory_space<vmem>>, vector<1x8x1xf32>
    tpu.vector_store %arg4[%c0_13, %c0_14, %c0_15], %13 {strides = array<i32>} : memref<1x8x1xf32, #tpu.memory_space<vmem>>, vector<1x8x1xf32>,
    return
  }
  func.func @transform_0(%arg0: i32, %arg1: i32) -> (i32, i32, i32) {
    %c0_i32 = arith.constant 0 : i32
    %c0_i32_0 = arith.constant 0 : i32
    return %arg0, %c0_i32, %arg1 : i32, i32, i32
  }
  func.func @transform_1(%arg0: i32, %arg1: i32) -> (i32, i32, i32) {
    %c0_i32 = arith.constant 0 : i32
    %c0_i32_0 = arith.constant 0 : i32
    %c0_i32_1 = arith.constant 0 : i32
    return %arg0, %c0_i32, %c0_i32_0 : i32, i32, i32
  }
  func.func @transform_2(%arg0: i32, %arg1: i32) -> (i32, i32, i32) {
    %c0_i32 = arith.constant 0 : i32
    %c0_i32_0 = arith.constant 0 : i32
    %c0_i32_1 = arith.constant 0 : i32
    return %arg0, %c0_i32, %c0_i32_0 : i32, i32, i32
  }
}

</mosaic_0001>

<bundles_post_ra>
// kernel: tpu_custom_call.1
= control target key start
LH: loop header
LB: loop body
LE: loop exit
PB: predicated region body
PF: predicated region fallthrough
CT: control target
= control target key end

     0   :  { %8 = vsyncpa [#allocation3], 0  ;;  %s79_s9 = smov [#allocation2]   ;;  %s121_s0 = inlined_call_operand.hbm [shape: f32[1,8,256], index: 0, kind: input, shape index: {}]   ;;  %s122_s1 = inlined_call_operand.vmem [shape: f32[1,8,1], index: 1, kind: output, shape index: {0}]   ;;  %s123_s2 = inlined_call_operand.vmem [shape: f32[1,8,1], index: 2, kind: output, shape index: {1}]  }
   0x1   :  { %s15_s10 = sshll.u32 %s79_s9, 4  ;;  %s16_s10 = int_to_ptr.vmem [resolvable:$true] %s15_s10 }
   0x2   :  { %s65_s11 = scalar_lea.vmem %s16_s10, 256  ;;  %p70_p1 = scmp.lt.s32.totalorder %s16_s10, %s16_s10 }
   0x3   :  { %p66_p0 = scmp.ne.s32.totalorder %s16_s10, %s65_s11  ;;  %p71_p2 = scmp.lt.s32.totalorder %s65_s11, %s65_s11 }
   0x5   :  { %p72_p3 = por %p71_p2, %p70_p1 }
   0x7   :  { %p73_p4 = pnand %p72_p3, %p66_p0 }
   0x9   :  { %76 = shalt.err (!%p73_p4)
}
   0xa   :  { %18 = dma.hbm_to_vmem [thread:$0]  %s121_s0, 256, %s16_s10, [#allocation3]  }
   0xb   :  { %77 = dma.done.wait [#allocation3], 256  }
   0xc   :  { %78 = vsyncadd [#allocation3], 4294967040  ;;  %vm26_vm0 = vcmask 7168   ;;  %v80_v0 = vmov 0.0   ;;  %v29_v1 = vld [vmem:[#allocation2] sm:$0xff]  ;;  %v30_v2 = vld [vmem:[#allocation2 + $0x8] sm:$0xff] }
   0xd   :  { %27 = vst.msk [vmem:[%s122_s1] sm:$0xff] %vm26_vm0, %v80_v0  ;;  %28 = vst.msk [vmem:[%s123_s2] sm:$0xff] %vm26_vm0, %v80_v0  ;;  %v32_v3 = vadd.f32 %v30_v2, %v29_v1  ;;  %v39_v4 = vmul.f32 %v29_v1, %v29_v1  ;;  %v40_v5 = vmul.f32 %v30_v2, %v30_v2 }
   0xf   :  { %33 = vadd.xlane.f32.xlu0 %v32_v3  ;;  %v41_v6 = vadd.f32 %v40_v5, %v39_v4 }
  0x13   :  { %42 = vadd.xlane.f32.xlu0 %v41_v6 }
  0x14   :  { %v31_v7 = vld [vmem:[%s122_s1] sm:$0xff] }
  0x15   :  { %v38_v10 = vld [vmem:[%s123_s2] sm:$0xff] }
  0x98   :  { %v34_v8 = vpop.xlane.xlu0 %33 }
  0x99   :  { %v35_v9 = vadd.f32 %v34_v8, %v31_v7 }
  0x9b   :  { %37 = vst.msk [vmem:[%s122_s1] sm:$0xff] %vm26_vm0, %v35_v9 }
  0x9c   :  { %v43_v11 = vpop.xlane.xlu0 %42 }
  0x9d   :  { %v44_v12 = vadd.f32 %v43_v11, %v38_v10 }
  0x9f   :  { %45 = vst.msk [vmem:[%s123_s2] sm:$0xff] %vm26_vm0, %v44_v12 }
  0xa0   :  { %54 = vsyncpa [#allocation3], 1 }

</bundles_post_ra>
